<compile_context>
chip_gen: v6e
topology: v6e:2x2x1
jax: 0.10.0
libtpu: 0.0.40
codegen_flags: <defaults>
</compile_context>

<pallas_src>
import jax
import jax.numpy as jnp
from jax.experimental import pallas as pl
from jax.experimental.pallas import tpu as pltpu

LANES = 128


def _masked_ce_tile_kernel(logits_ref, target_ref, mask_ref, out_ref):
    """One row tile: per-row CE, masked, partial numerator to a lane-dense out.

    logits_ref: (ROWS, C)     native dtype (bf16/f32), cast to f32 in VMEM
    target_ref: (ROWS, 1)     int32 class ids (padded rows hold 0)
    mask_ref  : (ROWS, 1)     float32 {0,1} (0 on padded / t >= length rows)
    out_ref   : (1, 1, LANES) float32, partial numerator broadcast over lanes
    """
    x = logits_ref[...].astype(jnp.float32)            # VPU cast (free vs HBM)
    tgt = target_ref[...]                               # (ROWS, 1)
    msk = mask_ref[...]                                  # (ROWS, 1)
    rows, c = x.shape

    # log-sum-exp with a single exp per element; (x - m) is reused for both the
    # exp path and the target-logit select path (keeps EUP/VPU work minimal).
    m = jnp.max(x, axis=-1, keepdims=True)               # (ROWS, 1)
    xm = x - m
    lse = jnp.log(jnp.sum(jnp.exp(xm), axis=-1, keepdims=True))     # (ROWS, 1)
    cls_iota = jax.lax.broadcasted_iota(jnp.int32, (rows, c), 1)
    tgt_shift = jnp.sum(jnp.where(cls_iota == tgt, xm, 0.0),
                        axis=-1, keepdims=True)          # = x[target] - m
    losses = lse - tgt_shift                             # = logsumexp(x) - x[target]
    # TODO(synk): for vocab-scale C (>8-16K) add a second 'arbitrary' grid axis
    # over C with an online (flash-style) max / sum-exp kept in per-row scratch.

    # where() (not mul) so garbage from the out-of-bounds tail of the last
    # partial logits tile can never leak NaN/inf into the sum.
    num = jnp.sum(jnp.where(msk > 0.0, losses, 0.0))
    out_ref[...] = jnp.broadcast_to(num, out_ref.shape).astype(jnp.float32)


def masked_cross_entropy_loss(logits_btc, target_bt, lengths_b, *,
                              max_rows=512,
                              vmem_budget_bytes=32 * 1024 * 1024):
    """sum(CE(logits, target) * mask) / sum(mask), mask[b, t] = t < lengths[b].

    logits_btc: (B, T, C) float (bf16/f32 — streamed in its native dtype)
    target_bt : (B, T)    int
    lengths_b : (B,)      int
    """
    B, T, C = logits_btc.shape
    N = B * T
    itemsize = jnp.dtype(logits_btc.dtype).itemsize

    # Row tile: large enough to amortize the ~0.35us per-grid-step overhead,
    # small enough that the double-buffered logits stream plus f32 temporaries
    # fit comfortably in VMEM (v7x has only 64 MiB physical).
    per_row_bytes = C * (2 * itemsize + 4 * 4)   # 2x dbl-buffered input + ~4 f32 temps
    rows = min(max_rows, max(8, vmem_budget_bytes // max(per_row_bytes, 1)))
    rows = max(8, (rows // 8) * 8)
    if N <= rows:
        rows = N                                  # single full-extent block
    num_tiles = pl.cdiv(N, rows)
    n_pad = num_tiles * rows

    logits2d = logits_btc.reshape(N, C)           # contiguous reshape, no transpose
    # TODO(synk): if the caller holds NCHW-style (B, C, T, 1) logits like the
    # PyTorch module, the transpose to class-last (B, T, C) happens outside this
    # kernel and is a full HBM rewrite unless XLA fuses it.

    tgt2d = target_bt.reshape(N, 1).astype(jnp.int32)
    t_idx = jnp.arange(T, dtype=jnp.int32)[None, :]
    mask2d = (t_idx < lengths_b.astype(jnp.int32)[:, None]).astype(
        jnp.float32).reshape(N, 1)
    if n_pad > N:
        # Pad only the tiny per-row arrays; logits stay un-padded (the garbage
        # rows read past the end of the last tile are killed by mask == 0).
        pad = n_pad - N
        tgt2d = jnp.pad(tgt2d, ((0, pad), (0, 0)))
        mask2d = jnp.pad(mask2d, ((0, pad), (0, 0)))

    cost = pl.CostEstimate(
        flops=6 * N * C,
        transcendentals=N * C,
        bytes_accessed=N * C * itemsize + n_pad * 8 + num_tiles * LANES * 4,
    )

    partials = pl.pallas_call(
        _masked_ce_tile_kernel,
        out_shape=jax.ShapeDtypeStruct((num_tiles, 1, LANES), jnp.float32),
        grid=(num_tiles,),
        in_specs=[
            pl.BlockSpec((rows, C), lambda i: (i, 0)),   # logits (native dtype)
            pl.BlockSpec((rows, 1), lambda i: (i, 0)),   # targets
            pl.BlockSpec((rows, 1), lambda i: (i, 0)),   # mask
        ],
        out_specs=pl.BlockSpec((1, 1, LANES), lambda i: (i, 0, 0)),
        compiler_params=pltpu.CompilerParams(
            dimension_semantics=("parallel",),           # megacore-shardable
            vmem_limit_bytes=48 * 1024 * 1024,
        ),
        cost_estimate=cost,
    )(logits2d, tgt2d, mask2d)

    num = jnp.sum(partials[:, 0, 0])
    # Denominator straight from lengths (== mask.sum()).  Dividing by zero when
    # all lengths are 0 yields NaN, matching the PyTorch module.
    den = jnp.sum(jnp.clip(lengths_b.astype(jnp.int32), 0, T)).astype(jnp.float32)
    return num / den


def masked_cross_entropy_loss_ref(logits_btc, target_bt, lengths_b):
    """Pure-JAX reference mirroring the PyTorch forward."""
    B, T, C = logits_btc.shape
    logp = jax.nn.log_softmax(logits_btc.astype(jnp.float32), axis=-1)
    losses = -jnp.take_along_axis(
        logp, target_bt[..., None].astype(jnp.int32), axis=-1)[..., 0]       # (B, T)
    mask = (jnp.arange(T)[None, :] < lengths_b[:, None]).astype(jnp.float32)  # (B, T)
    return (losses * mask).sum() / mask.sum()


if __name__ == "__main__":
    key = jax.random.PRNGKey(0)

    # Small shapes consistent with the module's usage:
    # batch=2, seq_len(T)=8, num_classes(C)=32, max_len = T
    B, T, C = 2, 8, 32
    k1, k2 = jax.random.split(key)
    logits = jax.random.normal(k1, (B, T, C), dtype=jnp.float32)
    target = jax.random.randint(k2, (B, T), 0, C, dtype=jnp.int32)
    lengths = jnp.array([8, 5], dtype=jnp.int32)

    loss = jax.block_until_ready(masked_cross_entropy_loss(logits, target, lengths))
    ref = masked_cross_entropy_loss_ref(logits, target, lengths)
    assert jnp.allclose(loss, ref, rtol=1e-5, atol=1e-5), (loss, ref)

    # Second case: forces multiple row tiles + a partial (padded) last tile,
    # exercising the grid / OOB-masking path.
    B2, T2, C2 = 3, 5, 32
    k3, k4 = jax.random.split(k2)
    logits2 = jax.random.normal(k3, (B2, T2, C2), dtype=jnp.float32)
    target2 = jax.random.randint(k4, (B2, T2), 0, C2, dtype=jnp.int32)
    lengths2 = jnp.array([5, 3, 0], dtype=jnp.int32)

    loss2 = jax.block_until_ready(
        masked_cross_entropy_loss(logits2, target2, lengths2, max_rows=8))
    ref2 = masked_cross_entropy_loss_ref(logits2, target2, lengths2)
    assert jnp.allclose(loss2, ref2, rtol=1e-5, atol=1e-5), (loss2, ref2)

    print("KERNEL_OK")
</pallas_src>

<mosaic_0001>
module attributes {stable_mosaic.version = 11 : i64} {
  func.func @_masked_ce_tile_kernel(%arg0: i32, %arg1: memref<16x32xf32, #tpu.memory_space<vmem>>, %arg2: memref<16x1xi32, #tpu.memory_space<vmem>>, %arg3: memref<16x1xf32, #tpu.memory_space<vmem>>, %arg4: memref<1x1x128xf32, #tpu.memory_space<vmem>>) attributes {dimension_semantics = [#tpu.dimension_semantics<parallel>], iteration_bounds = array<i64: 1>, scalar_prefetch = 0 : i64, scratch_operands = 0 : i64, tpu.core_type = #tpu.core_type<tc>, window_params = [{transform_indices = @transform_0, window_bounds = array<i64: 16, 32>}, {transform_indices = @transform_1, window_bounds = array<i64: 16, 1>}, {transform_indices = @transform_2, window_bounds = array<i64: 16, 1>}, {transform_indices = @transform_3, window_bounds = array<i64: 1, 1, 128>}]} {
    %c0 = arith.constant 0 : index
    %c0_0 = arith.constant 0 : index
    %0 = vector.load %arg1[%c0, %c0_0] : memref<16x32xf32, #tpu.memory_space<vmem>>, vector<16x32xf32>
    %c0_1 = arith.constant 0 : index
    %c0_2 = arith.constant 0 : index
    %1 = vector.load %arg2[%c0_1, %c0_2] : memref<16x1xi32, #tpu.memory_space<vmem>>, vector<16x1xi32>
    %c0_3 = arith.constant 0 : index
    %c0_4 = arith.constant 0 : index
    %2 = vector.load %arg3[%c0_3, %c0_4] : memref<16x1xf32, #tpu.memory_space<vmem>>, vector<16x1xf32>
    %cst = arith.constant dense<0xFF800000> : vector<16xf32>
    %3 = vector.multi_reduction <maximumf>, %0, %cst [1] : vector<16x32xf32> to vector<16xf32>
    %4 = vector.shape_cast %3 : vector<16xf32> to vector<16x1xf32>
    %5 = vector.broadcast %4 : vector<16x1xf32> to vector<16x32xf32>
    %6 = arith.subf %0, %5 : vector<16x32xf32>
    %7 = math.exp %6 : vector<16x32xf32>
    %cst_5 = arith.constant dense<0.000000e+00> : vector<16xf32>
    %8 = vector.multi_reduction <add>, %7, %cst_5 [1] : vector<16x32xf32> to vector<16xf32>
    %9 = vector.shape_cast %8 : vector<16xf32> to vector<16x1xf32>
    %10 = math.log %9 : vector<16x1xf32>
    %11 = tpu.iota {dimensions = array<i32: 1>} : vector<16x32xi32>
    %12 = vector.broadcast %1 : vector<16x1xi32> to vector<16x32xi32>
    %13 = arith.cmpi eq, %11, %12 : vector<16x32xi32>
    %cst_6 = arith.constant 0.000000e+00 : f32
    %14 = vector.broadcast %cst_6 : f32 to vector<16x32xf32>
    %15 = arith.select %13, %6, %14 : vector<16x32xi1>, vector<16x32xf32>
    %cst_7 = arith.constant dense<0.000000e+00> : vector<16xf32>
    %16 = vector.multi_reduction <add>, %15, %cst_7 [1] : vector<16x32xf32> to vector<16xf32>
    %17 = vector.shape_cast %16 : vector<16xf32> to vector<16x1xf32>
    %18 = arith.subf %10, %17 : vector<16x1xf32>
    %cst_8 = arith.constant 0.000000e+00 : f32
    %19 = vector.broadcast %cst_8 : f32 to vector<16x1xf32>
    %20 = arith.cmpf ogt, %2, %19 : vector<16x1xf32>
    %cst_9 = arith.constant 0.000000e+00 : f32
    %21 = vector.broadcast %cst_9 : f32 to vector<16x1xf32>
    %22 = arith.select %20, %18, %21 : vector<16x1xi1>, vector<16x1xf32>
    %23 = vector.shape_cast %22 : vector<16x1xf32> to vector<1x16x1xf32>
    %cst_10 = arith.constant dense<0.000000e+00> : vector<1xf32>
    %24 = vector.multi_reduction <add>, %23, %cst_10 [1, 2] : vector<1x16x1xf32> to vector<1xf32>
    %25 = vector.shape_cast %24 : vector<1xf32> to vector<1x1x1xf32>
    %26 = vector.extract %25[0, 0, 0] : f32 from vector<1x1x1xf32>
    %27 = vector.broadcast %26 : f32 to vector<1x1x128xf32>
    %c0_11 = arith.constant 0 : index
    %c0_12 = arith.constant 0 : index
    %c0_13 = arith.constant 0 : index
    %28 = vector.load %arg4[%c0_11, %c0_12, %c0_13] : memref<1x1x128xf32, #tpu.memory_space<vmem>>, vector<1x1x128xf32>
    tpu.vector_store %arg4[%c0_11, %c0_12, %c0_13], %27 {strides = array<i32>} : memref<1x1x128xf32, #tpu.memory_space<vmem>>, vector<1x1x128xf32>,
    return
  }
  func.func @transform_0(%arg0: i32) -> (i32, i32) {
    %c0_i32 = arith.constant 0 : i32
    %c0_i32_0 = arith.constant 0 : i32
    return %arg0, %c0_i32 : i32, i32
  }
  func.func @transform_1(%arg0: i32) -> (i32, i32) {
    %c0_i32 = arith.constant 0 : i32
    %c0_i32_0 = arith.constant 0 : i32
    return %arg0, %c0_i32 : i32, i32
  }
  func.func @transform_2(%arg0: i32) -> (i32, i32) {
    %c0_i32 = arith.constant 0 : i32
    %c0_i32_0 = arith.constant 0 : i32
    return %arg0, %c0_i32 : i32, i32
  }
  func.func @transform_3(%arg0: i32) -> (i32, i32, i32) {
    %c0_i32 = arith.constant 0 : i32
    %c0_i32_0 = arith.constant 0 : i32
    %c0_i32_1 = arith.constant 0 : i32
    return %arg0, %c0_i32, %c0_i32_0 : i32, i32, i32
  }
}

</mosaic_0001>

<bundles_post_ra>
// kernel: tpu_custom_call.1
= control target key start
LH: loop header
LB: loop body
LE: loop exit
PB: predicated region body
PF: predicated region fallthrough
CT: control target
= control target key end

     0   :  { %vm21_vm0 = vcmask 261120   ;;  %v133_v4 = vmov 0   ;;  %s182_s0 = inlined_call_operand.vmem [shape: f32[16,32], index: 0, kind: input, shape index: {}]   ;;  %s183_s1 = inlined_call_operand.vmem [shape: s32[16,1], index: 1, kind: input, shape index: {}]   ;;  %s184_s2 = inlined_call_operand.vmem [shape: f32[16,1], index: 2, kind: input, shape index: {}]   ;;  %s185_s3 = inlined_call_operand.hbm [shape: f32[1,1,128], index: 3, kind: output, shape index: {}]  }
   0x1   :  { %v15_v0 = vld [vmem:[%s182_s0] sm:$0xff]  ;;  %v16_v1 = vld [vmem:[%s182_s0 + $0x8] sm:$0xff]  ;;  %101 = vset.pattern.permute.xlu1 %v133_v4  ;;  %102 = vset.pattern.permute.xlu0 %v133_v4 }
   0x2   :  { %v17_v2 = vld [vmem:[%s183_s1] sm:$0xff]  ;;  %v22_v3 = vsel %vm21_vm0, %v15_v0, -inf }
   0x3   :  { %8 = vsyncpa [#allocation3], 0  ;;  %23 = vmax.xlane.f32.xlu0 %v22_v3  ;;  %47 = vperm.xlu1 %101, %v17_v2   ;;  %v25_v5 = vsel %vm21_vm0, %v16_v1, -inf  ;;  %v18_v6 = vld [vmem:[%s183_s1 + $0x8] sm:$0xff]  ;;  %v44_v13 = vlaneseq  ;;  %v19_v29 = vld [vmem:[%s184_s2] sm:$0xff]  ;;  %vm68_vm5 = vcmask 7168  }
   0x4   :  { %v20_v32 = vld [vmem:[%s184_s2 + $0x8] sm:$0xff]  ;;  %vm64_vm3 = vcmp.gt.f32.partialorder %v19_v29, 0.0  ;;  %s134_s2 = smov [#allocation2]  }
   0x5   :  { %v45_v15 = vand.u32 127, %v44_v13  ;;  %vm65_vm4 = vcmp.gt.f32.partialorder %v20_v32, 0.0  ;;  %s89_s22 = sshll.u32 %s134_s2, 4  ;;  %s90_s22 = int_to_ptr.vmem [resolvable:$true] %s89_s22 }
   0x6   :  { %s111_s24 = scalar_lea.vmem %s90_s22, 16  ;;  %s115_s25 = scalar_lea.vmem %s90_s22, 32 }
   0x7   :  { %26 = vmax.xlane.f32.xlu0 %v25_v5  ;;  %50 = vperm.xlu1 %101, %v18_v6   ;;  %p112_p0 = scmp.ne.s32.totalorder %s90_s22, %s111_s24  ;;  %p116_p1 = scmp.lt.s32.totalorder %s90_s22, %s90_s22 }
   0x8   :  { %p117_p2 = scmp.lt.s32.totalorder %s115_s25, %s111_s24 }
   0xa   :  { %p118_p3 = por %p117_p2, %p116_p1 }
   0xc   :  { %p119_p4 = pnand %p118_p3, %p112_p0 }
  0x7e   :  { %v48_v14 = vpop.permute.xlu1 %47 }
  0x7f   :  { %vm52_vm1 = vcmp.eq.s32.totalorder %v45_v15, %v48_v14 }
  0x82   :  { %v51_v17 = vpop.permute.xlu1 %50 }
  0x83   :  { %vm53_vm2 = vcmp.eq.s32.totalorder %v45_v15, %v51_v17 }
  0x8c   :  { %v24_v7 = vpop.xlane.xlu0 %23 }
  0x8d   :  { %v28_v8 = vsub.f32 %v15_v0, %v24_v7 }
  0x8f   :  { %v30_v9 = vmul.f32 1.442695, %v28_v8  ;;  %v54_v19 = vsel %vm52_vm1, %v28_v8, 0.0 }
  0x90   :  { %v27_v10 = vpop.xlane.xlu0 %26  ;;  %v56_v21 = vsel %vm21_vm0, %v54_v19, 0.0 }
  0x91   :  { %103 = vpow2.f32 %v30_v9  ;;  %v29_v11 = vsub.f32 %v16_v1, %v27_v10 }
  0x93   :  { %v32_v12 = vmul.f32 1.442695, %v29_v11  ;;  %v55_v23 = vsel %vm53_vm2, %v29_v11, 0.0 }
  0x94   :  { %v59_v24 = vsel %vm21_vm0, %v55_v23, 0.0 }
  0x95   :  { %105 = vpow2.f32 %v32_v12 }
  0x9e   :  { %v104_v16 = vpop.eup %103 }
  0x9f   :  { %v34_v18 = vsel %vm21_vm0, %v104_v16, 0.0 }
  0xa0   :  { %35 = vadd.xlane.f32.xlu0 %v34_v18 }
  0xa2   :  { %v106_v20 = vpop.eup %105 }
  0xa3   :  { %v37_v22 = vsel %vm21_vm0, %v106_v20, 0.0 }
  0xa4   :  { %57 = vadd.xlane.f32.xlu0 %v56_v21  ;;  %38 = vadd.xlane.f32.xlu1 %v37_v22 }
  0xa8   :  { %60 = vadd.xlane.f32.xlu0 %v59_v24 }
 0x129   :  { %v36_v25 = vpop.xlane.xlu0 %35 }
 0x12a   :  { %107 = vlog2.f32 %v36_v25 }
 0x12d   :  { %v39_v26 = vpop.xlane.xlu1 %38  ;;  %v58_v28 = vpop.xlane.xlu0 %57 }
 0x12e   :  { %109 = vlog2.f32 %v39_v26 }
 0x131   :  { %v61_v35 = vpop.xlane.xlu0 %60 }
 0x137   :  { %v108_v27 = vpop.eup %107 }
 0x138   :  { %v41_v30 = vmul.f32 0.6931472, %v108_v27 }
 0x13a   :  { %v62_v31 = vsub.f32 %v41_v30, %v58_v28 }
 0x13b   :  { %v110_v33 = vpop.eup %109 }
 0x13c   :  { %v43_v34 = vmul.f32 0.6931472, %v110_v33  ;;  %v66_v36 = vsel %vm64_vm3, %v62_v31, 0.0 }
 0x13d   :  { %v69_v39 = vsel %vm68_vm5, %v66_v36, 0.0 }
 0x13e   :  { %v63_v37 = vsub.f32 %v43_v34, %v61_v35 }
 0x140   :  { %v67_v38 = vsel %vm65_vm4, %v63_v37, 0.0 }
 0x141   :  { %v70_v40 = vsel %vm68_vm5, %v67_v38, 0.0 }
 0x142   :  { %v71_v41 = vadd.f32 %v70_v40, %v69_v39 }
 0x144   :  { %72 = vadd.xlane.f32.xlu0 %v71_v41 }
 0x1cd   :  { %v73_v42 = vpop.xlane.xlu0 %72 }
 0x1ce   :  { %v74_v43 = vrot.slane %v73_v42, 4 }
 0x1d0   :  { %v75_v44 = vadd.f32 %v74_v43, %v73_v42 }
 0x1d2   :  { %v76_v45 = vrot.slane %v75_v44, 2 }
 0x1d4   :  { %v77_v46 = vadd.f32 %v76_v45, %v75_v44 }
 0x1d6   :  { %v78_v47 = vrot.slane %v77_v46, 1 }
 0x1d8   :  { %v79_v48 = vadd.f32 %v78_v47, %v77_v46 }
 0x1da   :  { %97 = vpush %v79_v48 }
 0x20b   :  { %s98_s23 = spop %97 }
 0x20c   :  { %v81_v49 = vstv %s98_s23 }
 0x20d   :  { %82 = vst [vmem:[#allocation2] sm:$0x1] %v81_v49 }
 0x20e   :  { %122 = shalt.err (!%p119_p4)
}
 0x20f   :  { %92 = dma.vmem_to_hbm [thread:$0]  %s90_s22, 16, %s185_s3, [#allocation3]  }
 0x210   :  { %131 = dma.done.wait [#allocation3], 16  }
 0x211   :  { %132 = vsyncadd [#allocation3], 4294967280 }
 0x212   :  { %96 = vsyncpa [#allocation3], 1 }

</bundles_post_ra>
